<compile_context>
chip_gen: v6e
topology: v6e:2x2x1
jax: 0.10.0
libtpu: 0.0.40
codegen_flags: <defaults>
</compile_context>

<pallas_src>
import functools

import jax
import jax.numpy as jnp
from jax.experimental import pallas as pl
from jax.experimental.pallas import tpu as pltpu


def _round_up(x: int, m: int) -> int:
    return (x + m - 1) // m * m


def _cdiv(a: int, b: int) -> int:
    return -(-a // b)


def _sublane(dtype) -> int:
    # 8 rows per vreg for 32-bit, 16 for bf16, 32 for int8/fp8.
    return max(8, 32 // jnp.dtype(dtype).itemsize)


def _physical_vmem_bytes() -> int:
    try:
        return int(pltpu.get_tpu_info().vmem_capacity_bytes)
    except Exception:
        return 64 * 1024 * 1024   # conservative (v7x per-TensorCore VMEM)


def _ffn_kernel(x_ref, w13_ref, w2_ref, o_ref, acc_ref):
    # x_ref  : (tm, D)       row tile (constant across the hidden axis)
    # w13_ref: (D, 2*th)     fused [w1_tile_j | w3_tile_j] for hidden step j
    # w2_ref : (th, D)       w2 tile for hidden step j
    # o_ref  : (tm, D)       output row tile (resident across the hidden axis)
    # acc_ref: (tm, D) f32   accumulator scratch
    j = pl.program_id(1)

    @pl.when(j == 0)
    def _init():
        acc_ref[...] = jnp.zeros_like(acc_ref)

    x = x_ref[...]
    # One MXU stream for both gate projections (N = 2*th), f32 accumulation.
    h13 = jnp.dot(x, w13_ref[...], preferred_element_type=jnp.float32)
    th = h13.shape[-1] // 2
    h1 = h13[:, :th]
    h3 = h13[:, th:]
    h = (h1 * jax.nn.sigmoid(h1)) * h3            # SwiGLU gate, kept in f32
    acc_ref[...] += jnp.dot(h.astype(w2_ref.dtype), w2_ref[...],
                            preferred_element_type=jnp.float32)

    @pl.when(j == pl.num_programs(1) - 1)
    def _finalize():
        o_ref[...] = acc_ref[...].astype(o_ref.dtype)
    # TODO(synk): nn.Dropout is identity in eval mode; training-mode dropout
    # (pltpu.prng_seed + pltpu.prng_random_bits mask) is not applied here.


def prepare_ffn_weights(w1, w2, w3, *, th=None,
                        resident_weight_budget=20 * 1024 * 1024):
    """One-time weight packing (call at load time, NOT per forward call).

    w1, w3: (H, D) PyTorch Linear layout; w2: (D, H).
    Returns (w13, w2t, th):
      w13: (D, 2*H_pad), per-hidden-tile interleaved [w1_j | w3_j | w1_{j+1} ...]
      w2t: (H_pad, D)
      th : hidden tile width actually used.
    th=None picks automatically: keep all weights VMEM-resident (th=H, n_h=1,
    weights DMA'd once per call) if the double-buffered weight footprint fits
    `resident_weight_budget`; otherwise tile with th=512 (>=256 keeps the
    down-projection's K at MXU depth).
    """
    H, D = w1.shape
    itemsize = jnp.dtype(w1.dtype).itemsize

    if th is None:
        resident_bytes = 2 * 3 * D * H * itemsize   # double-buffered w13 + w2
        th = H if resident_bytes <= resident_weight_budget else min(512, H)
    if th >= H:
        th = H                      # single hidden tile: block == full dims
    else:
        assert th % 128 == 0, "hidden tile must be a multiple of 128 when tiling H"
    H_pad = _round_up(H, th)
    n_h = H_pad // th

    w1_t = w1.T                     # (D, H)
    w3_t = w3.T
    w2_t = w2.T                     # (H, D)
    if H_pad != H:
        pad = H_pad - H             # zero columns contribute 0 (silu(0)*0 = 0)
        w1_t = jnp.pad(w1_t, ((0, 0), (0, pad)))
        w3_t = jnp.pad(w3_t, ((0, 0), (0, pad)))
        w2_t = jnp.pad(w2_t, ((0, pad), (0, 0)))

    # Columns [j*2*th, j*2*th+th) hold w1 tile j; [j*2*th+th, (j+1)*2*th) w3 tile j.
    w13 = jnp.stack([w1_t.reshape(D, n_h, th), w3_t.reshape(D, n_h, th)], axis=2)
    w13 = w13.reshape(D, 2 * H_pad)
    return w13, w2_t, th


@functools.partial(jax.jit, static_argnames=("th", "tm", "weight_buffers"))
def feed_forward(x, w13, w2t, *, th, tm=None, weight_buffers=2):
    """x: (B, S, D); w13/w2t from prepare_ffn_weights. Returns (B, S, D)."""
    B, S, D = x.shape
    M = B * S
    H_pad = w2t.shape[0]
    n_h = H_pad // th

    w_dtype = w13.dtype
    out_dtype = x.dtype
    # bf16 weights -> bf16 activation path on the MXU (accumulation stays f32).
    x_in = x if x.dtype == w_dtype else x.astype(w_dtype)

    x_bytes = jnp.dtype(w_dtype).itemsize
    o_bytes = jnp.dtype(out_dtype).itemsize
    w_bytes = jnp.dtype(w_dtype).itemsize
    sub = _sublane(w_dtype)

    phys_vmem = _physical_vmem_bytes()
    budget = int(phys_vmem * 0.80)

    n_wbuf = weight_buffers if n_h > 1 else 2
    weight_vmem = n_wbuf * 3 * D * th * w_bytes
    per_row = D * (2 * x_bytes + 2 * o_bytes + 4)   # x, out (double-buffered) + f32 acc
    tm_cap = max(sub, (budget - weight_vmem) // max(per_row, 1))

    if tm is None:
        # v6e/v5e (128 MiB VMEM): aim for compute-bound AI; v7x (64 MiB): 512 suffices.
        tm = 1024 if phys_vmem >= 96 * 1024 * 1024 else 512
    tm = min(tm, tm_cap, _round_up(M, sub))
    tm = max(sub, (tm // sub) * sub)

    # Decode-shaped input with resident weights: split the single row tile in
    # two so the "parallel" row axis can occupy both TensorCores on v7x.
    if n_h == 1 and M <= tm and M >= 2 * sub:
        tm = _round_up(_cdiv(M, 2), sub)

    n_rows = _cdiv(M, tm)
    x2d = x_in.reshape(M, D)

    need = (2 * tm * D * x_bytes + 2 * tm * D * o_bytes + tm * D * 4
            + n_wbuf * D * 2 * th * w_bytes + n_wbuf * th * D * w_bytes)
    vmem_limit = int(min(max(int(need * 1.25) + (4 << 20), need + (2 << 20)),
                         int(phys_vmem * 0.94)))

    if n_h > 1 and weight_buffers != 2:
        # Deeper weight pipelining (v5e: hides DMA behind the slower MXU).
        w13_spec = pl.BlockSpec((D, 2 * th), lambda i, j: (0, j),
                                pipeline_mode=pl.Buffered(weight_buffers))
        w2_spec = pl.BlockSpec((th, D), lambda i, j: (j, 0),
                               pipeline_mode=pl.Buffered(weight_buffers))
    else:
        w13_spec = pl.BlockSpec((D, 2 * th), lambda i, j: (0, j))
        w2_spec = pl.BlockSpec((th, D), lambda i, j: (j, 0))

    # Weights are streamed once total when n_h == 1 (constant block index),
    # otherwise once per row tile.
    weight_stream_bytes = 3 * D * H_pad * w_bytes * (1 if n_h == 1 else n_rows)
    cost = pl.CostEstimate(
        flops=6 * M * D * H_pad,
        transcendentals=M * H_pad,
        bytes_accessed=M * D * (x_bytes + o_bytes) + weight_stream_bytes,
    )

    out = pl.pallas_call(
        _ffn_kernel,
        out_shape=jax.ShapeDtypeStruct((M, D), out_dtype),
        grid_spec=pltpu.PrefetchScalarGridSpec(
            num_scalar_prefetch=0,
            grid=(n_rows, n_h),                               # (rows, hidden)
            in_specs=[
                pl.BlockSpec((tm, D), lambda i, j: (i, 0)),   # x row tile
                w13_spec,                                     # fused w1/w3 tile
                w2_spec,                                      # w2 tile
            ],
            out_specs=pl.BlockSpec((tm, D), lambda i, j: (i, 0)),
            scratch_shapes=[pltpu.VMEM((tm, D), jnp.float32)],   # f32 accumulator
        ),
        compiler_params=pltpu.CompilerParams(
            dimension_semantics=("parallel", "arbitrary"),
            vmem_limit_bytes=vmem_limit,
        ),
        cost_estimate=cost,
    )(x2d, w13, w2t)

    return out.reshape(B, S, D)


def _reference(x, w1, w2, w3):
    xf = x.astype(jnp.float32)
    h1 = jnp.einsum("bsd,hd->bsh", xf, w1.astype(jnp.float32))
    h3 = jnp.einsum("bsd,hd->bsh", xf, w3.astype(jnp.float32))
    h = (h1 * jax.nn.sigmoid(h1)) * h3
    return jnp.einsum("bsh,dh->bsd", h, w2.astype(jnp.float32))


def _llama_hidden(dim, multiple_of):
    hidden = 4 * dim
    hidden = int(2 * hidden / 3)
    return multiple_of * ((hidden + multiple_of - 1) // multiple_of)


def _make_params(key, dim, hidden, dtype):
    k1, k2, k3 = jax.random.split(key, 3)
    b1 = 1.0 / (dim ** 0.5)
    b2 = 1.0 / (hidden ** 0.5)
    w1 = jax.random.uniform(k1, (hidden, dim), minval=-b1, maxval=b1).astype(dtype)
    w3 = jax.random.uniform(k3, (hidden, dim), minval=-b1, maxval=b1).astype(dtype)
    w2 = jax.random.uniform(k2, (dim, hidden), minval=-b2, maxval=b2).astype(dtype)
    return w1, w2, w3


if __name__ == "__main__":
    key = jax.random.PRNGKey(0)

    # --- Test 1: module default config (dim=32 -> hidden=96), f32, tiny M.
    #     Weights auto-resident (th=H, n_h=1); decode-split gives 2 row tiles.
    dim, multiple_of = 32, 32
    hidden = _llama_hidden(dim, multiple_of)          # 96
    batch, seq = 2, 8
    kx, kw, key = jax.random.split(key, 3)
    x = jax.random.normal(kx, (batch, seq, dim), dtype=jnp.float32)
    w1, w2, w3 = _make_params(kw, dim, hidden, jnp.float32)
    w13, w2t, th1 = prepare_ffn_weights(w1, w2, w3)
    out = jax.block_until_ready(feed_forward(x, w13, w2t, th=th1))
    ref = _reference(x, w1, w2, w3)
    assert out.shape == (batch, seq, dim)
    assert out.dtype == x.dtype
    assert jnp.allclose(out, ref, atol=1e-4, rtol=1e-4), "f32 mismatch vs reference"

    # --- Test 2: hidden-dim tiling with th=256 (H=352 padded to 512, n_h=2),
    #     ragged M (150, no wrapper padding), multiple row tiles, bf16 weights
    #     with the wrapper casting f32 activations to bf16 (f32 accumulation).
    dim2, multiple_of2 = 128, 32
    hidden2 = _llama_hidden(dim2, multiple_of2)       # 352
    batch2, seq2 = 2, 75                              # M = 150 (ragged)
    kx2, kw2, key = jax.random.split(key, 3)
    x2 = jax.random.normal(kx2, (batch2, seq2, dim2), dtype=jnp.float32)
    w1b, w2b, w3b = _make_params(kw2, dim2, hidden2, jnp.float32)

    w13b, w2tb, th2 = prepare_ffn_weights(w1b.astype(jnp.bfloat16),
                                          w2b.astype(jnp.bfloat16),
                                          w3b.astype(jnp.bfloat16), th=256)
    out2 = jax.block_until_ready(feed_forward(x2, w13b, w2tb, th=th2, tm=64))
    ref2 = _reference(x2, w1b, w2b, w3b)
    assert out2.shape == (batch2, seq2, dim2)
    assert jnp.allclose(out2.astype(jnp.float32), ref2, atol=1e-1, rtol=1e-1), \
        "bf16 mismatch vs f32 reference"

    print("KERNEL_OK")
</pallas_src>

<mosaic_0001>
module attributes {stable_mosaic.version = 11 : i64} {
  func.func @_ffn_kernel(%arg0: i32, %arg1: i32, %arg2: memref<8x32xf32, #tpu.memory_space<vmem>>, %arg3: memref<32x192xf32, #tpu.memory_space<vmem>>, %arg4: memref<96x32xf32, #tpu.memory_space<vmem>>, %arg5: memref<8x32xf32, #tpu.memory_space<vmem>>, %arg6: memref<8x32xf32, #tpu.memory_space<vmem>>) attributes {dimension_semantics = [#tpu.dimension_semantics<parallel>, #tpu.dimension_semantics<arbitrary>], iteration_bounds = array<i64: 2, 1>, scalar_prefetch = 0 : i64, scratch_operands = 1 : i64, tpu.core_type = #tpu.core_type<tc>, window_params = [{transform_indices = @transform_0, window_bounds = array<i64: 8, 32>}, {transform_indices = @transform_1, window_bounds = array<i64: 32, 192>}, {transform_indices = @transform_2, window_bounds = array<i64: 96, 32>}, {transform_indices = @transform_3, window_bounds = array<i64: 8, 32>}]} {
    %c0_i32 = arith.constant 0 : i32
    %0 = arith.cmpi eq, %arg1, %c0_i32 : i32
    %1 = arith.extui %0 : i1 to i32
    %c0_i32_0 = arith.constant 0 : i32
    %2 = arith.cmpi ne, %1, %c0_i32_0 : i32
    scf.if %2 {
      %cst_14 = arith.constant 0.000000e+00 : f32
      %23 = vector.broadcast %cst_14 : f32 to vector<8x32xf32>
      %c0_15 = arith.constant 0 : index
      %c0_16 = arith.constant 0 : index
      %24 = vector.load %arg6[%c0_15, %c0_16] : memref<8x32xf32, #tpu.memory_space<vmem>>, vector<8x32xf32>
      tpu.vector_store %arg6[%c0_15, %c0_16], %23 {strides = array<i32>} : memref<8x32xf32, #tpu.memory_space<vmem>>, vector<8x32xf32>,
    } else {
    }
    %c0 = arith.constant 0 : index
    %c0_1 = arith.constant 0 : index
    %3 = vector.load %arg2[%c0, %c0_1] : memref<8x32xf32, #tpu.memory_space<vmem>>, vector<8x32xf32>
    %c0_2 = arith.constant 0 : index
    %c0_3 = arith.constant 0 : index
    %4 = vector.load %arg3[%c0_2, %c0_3] : memref<32x192xf32, #tpu.memory_space<vmem>>, vector<32x192xf32>
    %cst = arith.constant dense<0.000000e+00> : vector<8x192xf32>
    %5 = tpu.matmul %3, %4, %cst {dimension_numbers = #tpu.dot_dimension_numbers<[1], [0], [0], [1], [0, 0, 1, 1], [], []>} : vector<8x32xf32>, vector<32x192xf32>, vector<8x192xf32> -> vector<8x192xf32>
    %6 = vector.extract_strided_slice %5 {offsets = [0, 0], sizes = [8, 96], strides = [1, 1]} : vector<8x192xf32> to vector<8x96xf32>
    %7 = vector.extract_strided_slice %5 {offsets = [0, 96], sizes = [8, 96], strides = [1, 1]} : vector<8x192xf32> to vector<8x96xf32>
    %8 = arith.negf %6 : vector<8x96xf32>
    %9 = math.exp %8 : vector<8x96xf32>
    %cst_4 = arith.constant 1.000000e+00 : f32
    %10 = vector.broadcast %cst_4 : f32 to vector<8x96xf32>
    %11 = arith.addf %10, %9 : vector<8x96xf32>
    %12 = arith.divf %10, %11 : vector<8x96xf32>
    %13 = arith.mulf %6, %12 : vector<8x96xf32>
    %14 = arith.mulf %13, %7 : vector<8x96xf32>
    %c0_5 = arith.constant 0 : index
    %c0_6 = arith.constant 0 : index
    %15 = vector.load %arg6[%c0_5, %c0_6] : memref<8x32xf32, #tpu.memory_space<vmem>>, vector<8x32xf32>
    %c0_7 = arith.constant 0 : index
    %c0_8 = arith.constant 0 : index
    %16 = vector.load %arg4[%c0_7, %c0_8] : memref<96x32xf32, #tpu.memory_space<vmem>>, vector<96x32xf32>
    %cst_9 = arith.constant dense<0.000000e+00> : vector<8x32xf32>
    %17 = tpu.matmul %14, %16, %cst_9 {dimension_numbers = #tpu.dot_dimension_numbers<[1], [0], [0], [1], [0, 0, 1, 1], [], []>} : vector<8x96xf32>, vector<96x32xf32>, vector<8x32xf32> -> vector<8x32xf32>
    %18 = arith.addf %15, %17 : vector<8x32xf32>
    %c0_10 = arith.constant 0 : index
    %c0_11 = arith.constant 0 : index
    %19 = vector.load %arg6[%c0_10, %c0_11] : memref<8x32xf32, #tpu.memory_space<vmem>>, vector<8x32xf32>
    tpu.vector_store %arg6[%c0_10, %c0_11], %18 {strides = array<i32>} : memref<8x32xf32, #tpu.memory_space<vmem>>, vector<8x32xf32>,
    %c0_i32_12 = arith.constant 0 : i32
    %20 = arith.cmpi eq, %arg1, %c0_i32_12 : i32
    %21 = arith.extui %20 : i1 to i32
    %c0_i32_13 = arith.constant 0 : i32
    %22 = arith.cmpi ne, %21, %c0_i32_13 : i32
    scf.if %22 {
      %c0_14 = arith.constant 0 : index
      %c0_15 = arith.constant 0 : index
      %23 = vector.load %arg6[%c0_14, %c0_15] : memref<8x32xf32, #tpu.memory_space<vmem>>, vector<8x32xf32>
      %c0_16 = arith.constant 0 : index
      %c0_17 = arith.constant 0 : index
      %24 = vector.load %arg5[%c0_16, %c0_17] : memref<8x32xf32, #tpu.memory_space<vmem>>, vector<8x32xf32>
      tpu.vector_store %arg5[%c0_16, %c0_17], %23 {strides = array<i32>} : memref<8x32xf32, #tpu.memory_space<vmem>>, vector<8x32xf32>,
    } else {
    }
    return
  }
  func.func @transform_0(%arg0: i32, %arg1: i32) -> (i32, i32) {
    %c0_i32 = arith.constant 0 : i32
    %c0_i32_0 = arith.constant 0 : i32
    return %arg0, %c0_i32 : i32, i32
  }
  func.func @transform_1(%arg0: i32, %arg1: i32) -> (i32, i32) {
    %c0_i32 = arith.constant 0 : i32
    %c0_i32_0 = arith.constant 0 : i32
    return %c0_i32, %arg1 : i32, i32
  }
  func.func @transform_2(%arg0: i32, %arg1: i32) -> (i32, i32) {
    %c0_i32 = arith.constant 0 : i32
    %c0_i32_0 = arith.constant 0 : i32
    return %arg1, %c0_i32 : i32, i32
  }
  func.func @transform_3(%arg0: i32, %arg1: i32) -> (i32, i32) {
    %c0_i32 = arith.constant 0 : i32
    %c0_i32_0 = arith.constant 0 : i32
    return %arg0, %c0_i32 : i32, i32
  }
}

</mosaic_0001>

<bundles_post_ra>
// kernel: feed_forward.1
= control target key start
LH: loop header
LB: loop body
LE: loop exit
PB: predicated region body
PF: predicated region fallthrough
CT: control target
= control target key end

     0   :  { %8 = vsyncpa [#allocation4], 0  ;;  %s923_s0 = inlined_call_operand.vmem [shape: f32[16,32], index: 0, kind: input, shape index: {}]   ;;  %s924_s1 = inlined_call_operand.vmem [shape: f32[32,192], index: 1, kind: input, shape index: {}]   ;;  %s925_s2 = inlined_call_operand.vmem [shape: f32[96,32], index: 2, kind: input, shape index: {}]   ;;  %s926_s3 = inlined_call_operand.hbm [shape: f32[16,32], index: 3, kind: output, shape index: {}]  }
   0x1   :  { %10 = vsyncpa [#allocation4 + $0x1], 0  ;;  %s753_s12 = smov 0   ;;  %s755_s13 = smov 0  }
   0x2   :  { %s757_s14 = smov 0   ;;  %s759_s15 = smov 0  }
   0x3   :  { %s761_s16 = smov 0   ;;  %s763_s17 = smov 0  }
   0x4 LB: > { %s533_s18 = sadd.s32 4294967295, %s727_s17   ;;  %s534_s19 = sadd.s32 4294967294, %s727_s17   ;;  %s727_s17 = sphi %s763_s17, %s16_s17   ;;  %s723_s16 = sphi %s761_s16, %s933_s16   ;;  %s719_s15 = sphi %s759_s15, %s932_s15   ;;  %s715_s14 = sphi %s757_s14, %s931_s14   ;;  %s711_s13 = sphi %s755_s13, %s930_s13   ;;  %s707_s12 = sphi %s753_s12, %s929_s12  }
   0x5   : > { %s28_s20 = sadd.s32 1, %s723_s16  ;;  %s113_s21 = sadd.s32 1, %s715_s14 }
   0x6   : > { %p30_p0 = scmp.ge.s32.totalorder %s28_s20, 2  ;;  %p123_p1 = scmp.ne.s32.totalorder %s715_s14, %s711_s13 }
   0x7   : > { %p124_p2 = scmp.eq.s32.totalorder %s533_s18, 1  ;;  %p129_p3 = scmp.ne.s32.totalorder %s711_s13, %s707_s12 }
   0x8   : > { %s935_s20 = smov (%p30_p0, %s28_s20), 0  ;;  %p130_p5 = scmp.eq.s32.totalorder %s534_s19, 1 }
   0x9   : > { %p793_p4 = por %p124_p2, %p123_p1  ;;  %s110_s23 = ssub.s32 %s723_s16, %s935_s20 }
   0xa   : > { %p539_p6 = scmp.ge.s32.totalorder %s727_s17, 1  ;;  %p111_p7 = scmp.eq.s32.totalorder %s110_s23, 0 }
   0xb   : > { %p800_p8 = por %p130_p5, %p129_p3  ;;  %p173_p9 = scmp.lt.s32.totalorder %s727_s17, 3 }
   0xc   : > { %s806_s25 = scalar_select %p111_p7, %s715_s14, %s113_s21  }
   0xd   : > { %p174_p10 = pnand %p539_p6, %p173_p9 }
   0xe   : > { %p206_p11 = scmp.lt.s32.totalorder (!%p174_p10), %s719_s15, 1  ;;  %s731_s10 = smov (!%p174_p10), 32  }
   0xf   : > { %177 = sbr.rel (%p174_p10) target bundleno = 560 (0x230), region = 32  ;;  %s203_s11 = sand.u32 (!%p174_p10), 1, %s711_s13  }
  0x10   : > { %s540_s18 = sshll.u32 (!%p174_p10), %s203_s11, 3  ;;  %s546_s19 = sshll.u32 (!%p174_p10), %s719_s15, 7 }
  0x11   : > { %s882_s28 = scalar_lea.hbm (!%p174_p10), %s926_s3, %s546_s19  ;;  %s732_s4 = smov (!%p174_p10), [#allocation3]  }
  0x12   : > { %s655_s5 = sshll.u32 (!%p174_p10), %s732_s4, 4  ;;  %s656_s5 = int_to_ptr.vmem [resolvable:$false] %s655_s5 }
  0x14   : > { %v236_v0 = vld [vmem:[%s924_s1 + $0x38] sm:$0xff]  ;;  %v235_v1 = vld [vmem:[%s924_s1 + $0x30] sm:$0xff]  ;;  %v234_v2 = vld [vmem:[%s924_s1 + $0x28] sm:$0xff]  ;;  %vm226_vm0 = vcmask 261120   ;;  %v729_v4 = vmov 0.0   ;;  %s207_s9 = scalar_select %p206_p11, %s719_s15, 1 }
  0x15   : > { %265 = vmatprep.subr.mxu0 %v236_v0  ;;  %v233_v3 = vld [vmem:[%s924_s1 + $0x20] sm:$0xff]  ;;  %305 = vmatprep.mubr.f32.mxu0 %v729_v4  ;;  %227 = vst.msk [vmem:[#allocation2] sm:$0xff] %vm226_vm0, %v729_v4  ;;  %v232_v5 = vld [vmem:[%s924_s1 + $0x18] sm:$0xff]  ;;  %v231_v6 = vld [vmem:[%s924_s1 + $0x10] sm:$0xff]  ;;  %vm730_vm1 = vmmov 0   ;;  %vm341_vm2 = vcmask 785408  }
  0x16   : > { %266 = vmatpush1.msra.mxu0 %v235_v1  ;;  %562 = vmatprep.subr.mxu1 %v729_v4  ;;  %v230_v7 = vld [vmem:[%s924_s1 + $0x8] sm:$0xff]  ;;  %s541_s21 = sshll.u32 %s207_s9, 3  ;;  %v229_v8 = vld [vmem:[%s924_s1] sm:$0xff]  ;;  %v340_v10 = vld [vmem:[%s925_s2 + $0x58] sm:$0xff]  ;;  %s657_s15 = scalar_lea.vmem %s656_s5, 256 }
  0x17   : > { %267 = vmatprep.subr.mxu0 %v234_v2  ;;  %s209_s29 = scalar_lea.vmem %s923_s0, %s541_s21  ;;  %v339_v11 = vld [vmem:[%s925_s2 + $0x50] sm:$0xff]  ;;  %563 = vmatpush3.msra.mxu1 %v340_v10  ;;  %v338_v12 = vld [vmem:[%s925_s2 + $0x48] sm:$0xff]  ;;  %v337_v13 = vld [vmem:[%s925_s2 + $0x40] sm:$0xff]  ;;  %s205_s21 = scalar_lea.vmem [#allocation3], %s540_s18 }
  0x18   : > { %268 = vmatpush1.msra.mxu0 %v233_v3  ;;  %v228_v9 = vld [vmem:[%s209_s29] sm:$0xff]  ;;  %564 = vmatprep.subr.mxu1 %v729_v4  ;;  %v336_v14 = vld [vmem:[%s925_s2 + $0x38] sm:$0xff]  ;;  %v335_v15 = vld [vmem:[%s925_s2 + $0x30] sm:$0xff]  ;;  %s436_s23 = sshll.u32 %s205_s21, 4  ;;  %s423_s29 = scalar_lea.sflag [#allocation4], %s203_s11  ;;  %s437_s23 = int_to_ptr.vmem [resolvable:$true] %s436_s23 }
  0x19   : > { %269 = vmatprep.subr.mxu0 %v232_v5  ;;  %565 = vmatpush3.msra.mxu1 %v339_v11  ;;  %v334_v16 = vld [vmem:[%s925_s2 + $0x28] sm:$0xff]  ;;  %v333_v17 = vld [vmem:[%s925_s2 + $0x20] sm:$0xff]  ;;  %v332_v18 = vld [vmem:[%s925_s2 + $0x18] sm:$0xff]  ;;  %s651_s30 = scalar_lea.vmem %s437_s23, 128  ;;  %p658_p1 = scmp.lt.s32.totalorder %s437_s23, %s656_s5 }
  0x1a   : > { %270 = vmatpush1.msra.mxu0 %v231_v6  ;;  %566 = vmatprep.subr.mxu1 %v729_v4  ;;  %v331_v19 = vld [vmem:[%s925_s2 + $0x10] sm:$0xff]  ;;  %v330_v20 = vld [vmem:[%s925_s2 + $0x8] sm:$0xff]  ;;  %v329_v21 = vld [vmem:[%s925_s2] sm:$0xff]  ;;  %p652_p12 = scmp.ne.s32.totalorder %s437_s23, %s651_s30  ;;  %p659_p2 = scmp.lt.s32.totalorder %s657_s15, %s651_s30 }
  0x1b   : > { %271 = vmatprep.subr.mxu0 %v230_v7  ;;  %567 = vmatpush3.msra.mxu1 %v338_v12 }
  0x1c   : > { %272 = vmatpush1.msra.mxu0 %v229_v8  ;;  %568 = vmatprep.subr.mxu1 %v729_v4  ;;  %v328_v33 = vld [vmem:[#allocation2] sm:$0xff]  ;;  %p653_p13 = pnand %p652_p12, %p793_p4  ;;  %p660_p3 = por %p659_p2, %p658_p1 }
  0x1d   : > { %542 = vmatmul.mubr.msk.f32.vlgmr.msra.gmra.mxu0 %vm226_vm0, %v228_v9  ;;  %569 = vmatpush3.msra.mxu1 %v337_v13 }
  0x1e   : > { %570 = vmatprep.subr.mxu1 %v729_v4  ;;  %586 = vmatprep.mubr.msk.f32.mxu1 %vm730_vm1, %v729_v4  ;;  %p654_p0 = pneg %p653_p13 }
  0x1f   : > { %571 = vmatpush3.msra.mxu1 %v336_v14 }
  0x20   : > { %572 = vmatprep.subr.mxu1 %v729_v4  ;;  %p661_p5 = pnand %p660_p3, %p654_p0 }
  0x21   : > { %573 = vmatpush3.msra.mxu1 %v335_v15 }
  0x22   : > { %574 = vmatprep.subr.mxu1 %v729_v4 }
  0x23   : > { %575 = vmatpush3.msra.mxu1 %v334_v16 }
  0x24   : > { %576 = vmatprep.subr.mxu1 %v729_v4 }
  0x25   : > { %577 = vmatpush3.msra.mxu1 %v333_v17 }
  0x26   : > { %578 = vmatprep.subr.mxu1 %v729_v4 }
  0x27   : > { %579 = vmatpush3.msra.mxu1 %v332_v18 }
  0x28   : > { %580 = vmatprep.subr.mxu1 %v729_v4 }
  0x29   : > { %581 = vmatpush3.msra.mxu1 %v331_v19 }
  0x2a   : > { %582 = vmatprep.subr.mxu1 %v729_v4 }
  0x2b   : > { %583 = vmatpush3.msra.mxu1 %v330_v20 }
  0x2c   : > { %584 = vmatprep.subr.mxu1 %v729_v4 }
  0x2d   : > { %585 = vmatpush3.msra.mxu1 %v329_v21 }
  0xdd   : > { %v307_v22 = vpop.f32.mrf.mxu0 }
  0xde   : > { %321 = vrot.lane.b32.xlu0 %v307_v22, %s731_s10  ;;  %v543_v24 = vmul.f32 -1.442695, %v307_v22 }
  0xdf   : > { %v309_v23 = vpop.f32.mrf.mxu0 }
  0xe0   : > { %647 = vpow2.f32 %v543_v24 }
  0xe2   : > { %323 = vrot.lane.b32.xlu0 %v309_v23, %s731_s10 }
  0xed   : > { %v648_v25 = vpop.eup %647 }
  0xee   : > { %v315_v26 = vadd.f32 1.0, %v648_v25 }
  0xf0   : > { %649 = vrcp.f32 %v315_v26 }
  0xfd   : > { %v650_v28 = vpop.eup %649 }
  0xfe   : > { %v318_v29 = vmul.f32 %v650_v28, %v307_v22 }
 0x150   : > { %v322_v27 = vpop.permute.xlu0 %321 }
 0x154   : > { %v324_v30 = vpop.permute.xlu0 %323 }
 0x155   : > { %v325_v31 = vsel %vm226_vm0, %v322_v27, %v324_v30 }
 0x156   : > { %v327_v32 = vmul.f32 %v325_v31, %v318_v29 }
 0x158   : > { %587 = vmatmul.mubr.msk.f32.vlgmr.msra.gmra.mxu1 %vm341_vm2, %v327_v32 }
 0x218   : > { %v411_v34 = vpop.f32.mrf.mxu1 }
 0x219   : > { %v415_v35 = vadd.f32 %v411_v34, %v328_v33 }
 0x21a   : > { %v588_v36 = vpop.f32.mrf.mxu1 }
 0x21b   : > { %416 = vst.msk [vmem:[#allocation2] sm:$0xff] %vm226_vm0, %v415_v35 }
 0x222   : > { %v420_v37 = vld [vmem:[#allocation2] sm:$0xff] }
 0x223   : > { %421 = vst.msk [vmem:[%s205_s21] sm:$0xff] %vm226_vm0, %v420_v37 }
 0x224   : > { %664 = shalt.err (!%p661_p5)
}
 0x225   : > { %s665_s6 = scalar_lea.hbm %s882_s28, 128  ;;  %s669_s9 = scalar_lea.hbm %s926_s3, 256 }
 0x226   : > { %p666_p6 = scmp.ne.s32.totalorder %s882_s28, %s665_s6  ;;  %p670_p10 = scmp.lt.s32.totalorder %s882_s28, %s926_s3 }
 0x227   : > { %p671_p11 = scmp.lt.s32.totalorder %s669_s9, %s665_s6 }
 0x228   : > { %p667_p7 = pnand %p666_p6, %p793_p4 }
 0x229   : > { %p672_p12 = por %p671_p11, %p670_p10 }
 0x22a   : > { %p668_p9 = pneg %p667_p7 }
 0x22c   : > { %p673_p13 = pnand %p672_p12, %p668_p9 }
 0x22e   : > { %676 = shalt.err (!%p673_p13)
}
 0x22f   : > { %589 = dma.vmem_to_hbm [thread:$0]  (%p793_p4), %s437_s23, 128, %s882_s28, %s423_s29  }
 0x230 PF: > { %p595_p0 = scmp.ge.s32.totalorder %s727_s17, 2  ;;  %s448_s18 = sand.u32 1, %s707_s12  }
 0x231   : > { %s449_s19 = scalar_lea.sflag [#allocation4], %s448_s18 }
 0x232   : > { %p592_p1 = pnand %p595_p0, %p800_p8 }
 0x234   : > { %p593_p2 = pneg %p592_p1 }
 0x236   : > { %702 = dma.done.wait (%p593_p2), %s449_s19, 128  }
 0x237   : > { %704 = vsyncadd (%p593_p2), %s449_s19, 4294967168  ;;  %s16_s17 = sadd.s32 1, %s727_s17   ;;  %s929_s12 = smov %s711_s13 }
 0x238   : > { %p13_p3 = scmp.ge.s32.totalorder %s16_s17, 4   ;;  %s930_s13 = smov %s715_s14 }
 0x239   : > { %s931_s14 = smov %s806_s25  ;;  %s932_s15 = smov %s723_s16 }
 0x23a   : > { %s933_s16 = smov %s935_s20  ;;  %15 = sbr.rel (!%p13_p3) target bundleno = 4 (0x4), region = 81 }
 0x23f   :  { %454 = vsyncpa [#allocation4], 1 }
 0x240   :  { %456 = vsyncpa [#allocation4 + $0x1], 1 }

</bundles_post_ra>
